<compile_context>
chip_gen: v7x
topology: tpu7x:2x2x1
jax: 0.10.0
libtpu: 0.0.40
codegen_flags: <defaults>
</compile_context>

<pallas_src>
import functools

import jax
import jax.numpy as jnp
from jax import lax
from jax.experimental import pallas as pl
from jax.experimental.pallas import tpu as pltpu


def _round_up(x, m):
    return (x + m - 1) // m * m


def _apply_activation(acc, activation, act_value):
    """Activation epilogue in f32 (VPU/EUP)."""
    if activation == "relu":
        return jnp.maximum(acc, 0.0)
    if activation in ("lrelu", "prelu"):
        return jnp.where(acc >= 0.0, acc, act_value * acc)
    if activation == "selu":
        alpha = 1.6732632423543772848170429916717
        scale = 1.0507009873554804934193349852946
        return scale * jnp.where(acc > 0.0, acc, alpha * (jnp.exp(acc) - 1.0))
    if activation == "tanh":
        return jnp.tanh(acc)
    if activation == "sigmoid":
        return jax.nn.sigmoid(acc)
    if activation == "none":
        return acc
    raise ValueError(f"Unsupported activation: {activation}")


def _mm_nk(x_tile, w_tile):
    """(tm, tk) x (tn, tk) -> (tm, tn) f32 on the MXU (contract K directly)."""
    return lax.dot_general(
        x_tile, w_tile,
        dimension_numbers=(((1,), (1,)), ((), ())),
        preferred_element_type=jnp.float32)


def _kernel_single_k(*refs, activation, act_value, use_bias):
    # Grid (j over N-tiles, i over M-tiles); whole K in one tile.
    # x_ref: (tm, K)  w_ref: (tn, K)  [b_ref: (1, tn)]  o_ref: (tm, tn)
    if use_bias:
        x_ref, w_ref, b_ref, o_ref = refs
    else:
        x_ref, w_ref, o_ref = refs
        b_ref = None

    acc = _mm_nk(x_ref[...], w_ref[...])
    if use_bias:
        acc = acc + b_ref[...].astype(jnp.float32)
    o_ref[...] = _apply_activation(acc, activation, act_value).astype(o_ref.dtype)


def _kernel_tiled_k(*refs, activation, act_value, use_bias):
    # Grid (j over N-tiles, i over M-tiles, k over K-tiles); k innermost.
    # x_ref: (tm, tk)  w_ref: (tn, tk)  [b_ref: (1, tn)]  o_ref: (tm, tn)
    # acc_ref: (tm, tn) f32 scratch, persistent across the k axis.
    if use_bias:
        x_ref, w_ref, b_ref, o_ref, acc_ref = refs
    else:
        x_ref, w_ref, o_ref, acc_ref = refs
        b_ref = None

    k = pl.program_id(2)

    @pl.when(k == 0)
    def _init():
        if use_bias:
            acc_ref[...] = jnp.broadcast_to(
                b_ref[...].astype(jnp.float32), acc_ref.shape)
        else:
            acc_ref[...] = jnp.zeros_like(acc_ref)

    acc_ref[...] += _mm_nk(x_ref[...], w_ref[...])

    @pl.when(k == pl.num_programs(2) - 1)
    def _finalize():
        o_ref[...] = _apply_activation(
            acc_ref[...], activation, act_value).astype(o_ref.dtype)


def linear_block_forward(x, weight, bias=None, *, activation="none",
                         tm=256, tn=512, tk=512, compute_dtype=None):
    """Pallas LinearBlock forward.

    x:      (M, K)
    weight: (N, K)  -- PyTorch nn.Linear layout (out_dim, in_dim); NOT transposed.
    bias:   (N,) or None
    activation: 'none' | 'relu' | 'lrelu[_slope]' | 'prelu' | 'selu'
                | 'tanh' | 'sigmoid'
    compute_dtype: optional (e.g. jnp.bfloat16) to cast MXU operands; the
                   accumulation and activation epilogue stay in f32.
    """
    M, K = x.shape
    N, K2 = weight.shape
    assert K == K2, (x.shape, weight.shape)

    # Parse 'lrelu_0.1' style activation spec (mirrors the PyTorch module).
    parts = activation.split("_")
    act_name = parts[0]
    act_value = float(parts[1]) if len(parts) > 1 else 0.2
    if act_name == "prelu":
        act_value = 0.25  # nn.PReLU default init

    use_bias = bias is not None
    out_dtype = x.dtype
    op_dtype = (jnp.dtype(compute_dtype) if compute_dtype is not None
                else jnp.dtype(x.dtype))

    # Adaptive tiles respecting the (8, 128) layout constraint; padded shapes.
    tm = min(tm, _round_up(M, 8))
    tn = min(tn, _round_up(N, 128))
    tk = min(tk, _round_up(K, 128))
    Mp, Np, Kp = _round_up(M, tm), _round_up(N, tn), _round_up(K, tk)

    xp = x if (Mp == M and Kp == K) else jnp.pad(x, ((0, Mp - M), (0, Kp - K)))
    wp = weight if (Np == N and Kp == K) else jnp.pad(
        weight, ((0, Np - N), (0, Kp - K)))
    if compute_dtype is not None:
        xp = xp.astype(op_dtype)
        wp = wp.astype(op_dtype)

    single_k = (Kp == tk)

    args = [xp, wp]
    if use_bias:
        bp = bias if Np == N else jnp.pad(bias, (0, Np - N))
        args.append(bp.reshape(1, Np))

    in_isz = op_dtype.itemsize
    out_isz = jnp.dtype(out_dtype).itemsize
    n_transcendental = Mp * Np if act_name in ("selu", "tanh", "sigmoid") else 0
    cost = pl.CostEstimate(
        flops=2 * Mp * Np * Kp,
        transcendentals=n_transcendental,
        bytes_accessed=(Mp * Kp + Np * Kp) * in_isz + Mp * Np * out_isz)

    if single_k:
        # Fast path: no K reduction axis, no accumulator scratch; matmul +
        # bias + activation fused directly into the output store.
        grid = (Np // tn, Mp // tm)
        in_specs = [
            pl.BlockSpec((tm, tk), lambda j, i: (i, 0)),   # x tile
            pl.BlockSpec((tn, tk), lambda j, i: (j, 0)),   # weight tile (N,K)
        ]
        if use_bias:
            in_specs.append(pl.BlockSpec((1, tn), lambda j, i: (0, j)))
        out_specs = pl.BlockSpec((tm, tn), lambda j, i: (i, j))
        kernel = functools.partial(
            _kernel_single_k,
            activation=act_name, act_value=act_value, use_bias=use_bias)
        scratch_shapes = []
        dim_sem = ("parallel", "parallel")
        vmem_need = (2 * (tm * tk + tn * tk + tn) * in_isz
                     + 2 * tm * tn * out_isz)
    else:
        # General path: K tiled (innermost, "arbitrary") with an f32 VMEM
        # accumulator and pl.when init/finalize.
        grid = (Np // tn, Mp // tm, Kp // tk)
        in_specs = [
            pl.BlockSpec((tm, tk), lambda j, i, k: (i, k)),   # x tile
            pl.BlockSpec((tn, tk), lambda j, i, k: (j, k)),   # weight tile
        ]
        if use_bias:
            in_specs.append(pl.BlockSpec((1, tn), lambda j, i, k: (0, j)))
        out_specs = pl.BlockSpec((tm, tn), lambda j, i, k: (i, j))
        kernel = functools.partial(
            _kernel_tiled_k,
            activation=act_name, act_value=act_value, use_bias=use_bias)
        scratch_shapes = [pltpu.VMEM((tm, tn), jnp.float32)]
        dim_sem = ("parallel", "parallel", "arbitrary")
        vmem_need = (2 * (tm * tk + tn * tk + tn) * in_isz
                     + 2 * tm * tn * out_isz + tm * tn * 4)

    vmem_limit = min(max(vmem_need + (4 << 20), 32 << 20), 56 << 20)

    out = pl.pallas_call(
        kernel,
        out_shape=jax.ShapeDtypeStruct((Mp, Np), out_dtype),
        grid_spec=pltpu.PrefetchScalarGridSpec(
            num_scalar_prefetch=0,
            grid=grid,
            in_specs=in_specs,
            out_specs=out_specs,
            scratch_shapes=scratch_shapes,
        ),
        compiler_params=pltpu.CompilerParams(
            dimension_semantics=dim_sem,
            vmem_limit_bytes=vmem_limit),
        cost_estimate=cost,
    )(*args)

    if (Mp, Np) != (M, N):
        out = out[:M, :N]
    return out


def _reference(x, weight, bias, activation):
    out = x @ weight.T
    if bias is not None:
        out = out + bias
    parts = activation.split("_")
    name = parts[0]
    slope = float(parts[1]) if len(parts) > 1 else 0.2
    if name == "relu":
        out = jnp.maximum(out, 0.0)
    elif name == "lrelu":
        out = jnp.where(out >= 0, out, slope * out)
    elif name == "prelu":
        out = jnp.where(out >= 0, out, 0.25 * out)
    elif name == "selu":
        out = jax.nn.selu(out)
    elif name == "tanh":
        out = jnp.tanh(out)
    elif name == "sigmoid":
        out = jax.nn.sigmoid(out)
    return out


if __name__ == "__main__":
    key = jax.random.PRNGKey(0)

    # --- Case 1: LinearBlock(64, 128, activation=..., bias=True), batch=16 ---
    batch, input_dim, output_dim = 16, 64, 128
    kx, kw, kb = jax.random.split(key, 3)
    x = jax.random.normal(kx, (batch, input_dim), dtype=jnp.float32)
    bound = 1.0 / (input_dim ** 0.5)
    weight = jax.random.uniform(kw, (output_dim, input_dim), jnp.float32,
                                -bound, bound)
    bias = jax.random.uniform(kb, (output_dim,), jnp.float32, -bound, bound)

    for act in ("none", "lrelu", "lrelu_0.1", "relu", "prelu", "selu",
                "tanh", "sigmoid"):
        out = jax.block_until_ready(
            linear_block_forward(x, weight, bias, activation=act))
        ref = _reference(x, weight, bias, act)
        assert out.shape == (batch, output_dim)
        assert jnp.allclose(out, ref, atol=1e-5, rtol=1e-5), act

    # bias=False path (no bias operand / DMA stream at all).
    out = jax.block_until_ready(
        linear_block_forward(x, weight, None, activation="relu"))
    ref = _reference(x, weight, None, "relu")
    assert jnp.allclose(out, ref, atol=1e-5, rtol=1e-5)

    # --- Case 2: non-aligned shapes exercising padding + K-tiling path ---
    M2, K2, N2 = 100, 320, 300
    k1, k2, k3 = jax.random.split(jax.random.PRNGKey(1), 3)
    x2 = jax.random.normal(k1, (M2, K2), dtype=jnp.float32)
    b2 = 1.0 / (K2 ** 0.5)
    w2 = jax.random.uniform(k2, (N2, K2), jnp.float32, -b2, b2)
    bb2 = jax.random.uniform(k3, (N2,), jnp.float32, -b2, b2)
    out2 = jax.block_until_ready(
        linear_block_forward(x2, w2, bb2, activation="lrelu",
                             tm=64, tn=128, tk=128))
    ref2 = _reference(x2, w2, bb2, "lrelu")
    assert out2.shape == (M2, N2)
    assert jnp.allclose(out2, ref2, atol=1e-3, rtol=1e-3)

    print("KERNEL_OK")
</pallas_src>

<mosaic_0001>
module attributes {stable_mosaic.version = 11 : i64} {
  func.func @_kernel_single_k(%arg0: i32, %arg1: i32, %arg2: memref<16x128xf32, #tpu.memory_space<vmem>>, %arg3: memref<128x128xf32, #tpu.memory_space<vmem>>, %arg4: memref<1x128xf32, #tpu.memory_space<vmem>>, %arg5: memref<16x128xf32, #tpu.memory_space<vmem>>) attributes {dimension_semantics = [#tpu.dimension_semantics<parallel>, #tpu.dimension_semantics<parallel>], iteration_bounds = array<i64: 1, 1>, scalar_prefetch = 0 : i64, scratch_operands = 0 : i64, tpu.core_type = #tpu.core_type<tc>, window_params = [{transform_indices = @transform_0, window_bounds = array<i64: 16, 128>}, {transform_indices = @transform_1, window_bounds = array<i64: 128, 128>}, {transform_indices = @transform_2, window_bounds = array<i64: 1, 128>}, {transform_indices = @transform_3, window_bounds = array<i64: 16, 128>}]} {
    %c0 = arith.constant 0 : index
    %c0_0 = arith.constant 0 : index
    %0 = vector.load %arg2[%c0, %c0_0] : memref<16x128xf32, #tpu.memory_space<vmem>>, vector<16x128xf32>
    %c0_1 = arith.constant 0 : index
    %c0_2 = arith.constant 0 : index
    %1 = vector.load %arg3[%c0_1, %c0_2] : memref<128x128xf32, #tpu.memory_space<vmem>>, vector<128x128xf32>
    %cst = arith.constant dense<0.000000e+00> : vector<16x128xf32>
    %2 = tpu.matmul %0, %1, %cst {dimension_numbers = #tpu.dot_dimension_numbers<[1], [1], [0], [0], [0, 0, 1, 0], [], []>} : vector<16x128xf32>, vector<128x128xf32>, vector<16x128xf32> -> vector<16x128xf32>
    %c0_3 = arith.constant 0 : index
    %c0_4 = arith.constant 0 : index
    %3 = vector.load %arg4[%c0_3, %c0_4] : memref<1x128xf32, #tpu.memory_space<vmem>>, vector<1x128xf32>
    %4 = vector.broadcast %3 : vector<1x128xf32> to vector<16x128xf32>
    %5 = arith.addf %2, %4 : vector<16x128xf32>
    %c0_5 = arith.constant 0 : index
    %c0_6 = arith.constant 0 : index
    %6 = vector.load %arg5[%c0_5, %c0_6] : memref<16x128xf32, #tpu.memory_space<vmem>>, vector<16x128xf32>
    tpu.vector_store %arg5[%c0_5, %c0_6], %5 {strides = array<i32>} : memref<16x128xf32, #tpu.memory_space<vmem>>, vector<16x128xf32>,
    return
  }
  func.func @transform_0(%arg0: i32, %arg1: i32) -> (i32, i32) {
    %c0_i32 = arith.constant 0 : i32
    %c0_i32_0 = arith.constant 0 : i32
    return %arg1, %c0_i32 : i32, i32
  }
  func.func @transform_1(%arg0: i32, %arg1: i32) -> (i32, i32) {
    %c0_i32 = arith.constant 0 : i32
    %c0_i32_0 = arith.constant 0 : i32
    return %arg0, %c0_i32 : i32, i32
  }
  func.func @transform_2(%arg0: i32, %arg1: i32) -> (i32, i32) {
    %c0_i32 = arith.constant 0 : i32
    %c0_i32_0 = arith.constant 0 : i32
    return %c0_i32, %arg0 : i32, i32
  }
  func.func @transform_3(%arg0: i32, %arg1: i32) -> (i32, i32) {
    %c0_i32 = arith.constant 0 : i32
    return %arg1, %arg0 : i32, i32
  }
}

</mosaic_0001>

<bundles_post_ra>
// kernel: tpu_custom_call.1
= control target key start
LH: loop header
LB: loop body
LE: loop exit
PB: predicated region body
PF: predicated region fallthrough
CT: control target
= control target key end

     0   :  { %8 = vsyncpa [#allocation3], 0  ;;  %s399_s0 = inlined_call_operand.hbm [shape: f32[16,128], index: 0, kind: input, shape index: {}]   ;;  %s400_s1 = inlined_call_operand.hbm [shape: f32[128,128], index: 1, kind: input, shape index: {}]   ;;  %s401_s2 = inlined_call_operand.vmem [shape: f32[1,128], index: 2, kind: input, shape index: {}]   ;;  %s402_s3 = inlined_call_operand.hbm [shape: f32[16,128], index: 3, kind: output, shape index: {}]  }
   0x1   :  { %9 = vsyncpa [#allocation6], 0 }
   0x2   :  { %10 = vsyncpa [#allocation4], 0  ;;  %s326_s12 = smov [#allocation2]   ;;  %s254_s16 = scalar_lea.hbm %s399_s0, 256 }
   0x3   :  { %s16_s13 = sshll.u32 %s326_s12, 4  ;;  %p255_p0 = scmp.ne.s32.totalorder %s399_s0, %s254_s16  ;;  %s17_s13 = int_to_ptr.vmem [resolvable:$true] %s16_s13 }
   0x4   :  { %p258_p1 = scmp.lt.u32.totalorder %s254_s16, %s399_s0 }
   0x6   :  { %p260_p2 = pnand %p258_p1, %p255_p0 }
   0x8   :  { %263 = shalt.err (!%p260_p2)
}
   0x9   :  { %s264_s21 = scalar_lea.vmem %s17_s13, 256  ;;  %p269_p4 = scmp.lt.s32.totalorder %s17_s13, %s17_s13 }
   0xa   :  { %p265_p3 = scmp.ne.s32.totalorder %s17_s13, %s264_s21  ;;  %p270_p5 = scmp.lt.s32.totalorder %s264_s21, %s264_s21 }
   0xc   :  { %p271_p6 = por %p270_p5, %p269_p4 }
   0xe   :  { %p272_p7 = pnand %p271_p6, %p265_p3 }
  0x10   :  { %275 = shalt.err (!%p272_p7)
}
  0x11   :  { %s327_s22 = smov 128   ;;  %s328_s23 = smov 8  }
  0x12   :  { %22 = dma.hbm_to_vmem [thread:$0]  %s399_s0, 256, %s17_s13, [#allocation3], %s327_s22, %s327_s22, %s328_s23  }
  0x13   :  { %s329_s26 = smov [#allocation5]   ;;  %s276_s30 = scalar_lea.hbm %s400_s1, 2048 }
  0x14   :  { %s28_s27 = sshll.u32 %s329_s26, 4  ;;  %p277_p8 = scmp.ne.s32.totalorder %s400_s1, %s276_s30  ;;  %s29_s27 = int_to_ptr.vmem [resolvable:$true] %s28_s27 }
  0x15   :  { %p280_p9 = scmp.lt.u32.totalorder %s276_s30, %s400_s1 }
  0x17   :  { %p282_p10 = pnand %p280_p9, %p277_p8 }
  0x19   :  { %285 = shalt.err (!%p282_p10)
}
  0x1a   :  { %s286_s8 = scalar_lea.vmem %s29_s27, 2048  ;;  %p291_p12 = scmp.lt.s32.totalorder %s29_s27, %s29_s27 }
  0x1b   :  { %p287_p11 = scmp.ne.s32.totalorder %s29_s27, %s286_s8  ;;  %p292_p13 = scmp.lt.s32.totalorder %s286_s8, %s286_s8 }
  0x1d   :  { %p293_p0 = por %p292_p13, %p291_p12 }
  0x1f   :  { %p294_p1 = pnand %p293_p0, %p287_p11 }
  0x21   :  { %297 = shalt.err (!%p294_p1)
}
  0x22   :  { %34 = dma.hbm_to_vmem [thread:$0]  %s400_s1, 2048, %s29_s27, [#allocation6], %s327_s22, %s327_s22, %s328_s23  }
  0x23   :  { %320 = dma.done.wait [#allocation3], 256  }
  0x24   :  { %321 = vsyncadd [#allocation3], 4294967040 }
  0x25   :  { %322 = dma.done.wait [#allocation6], 2048  }
  0x26   :  { %323 = vsyncadd [#allocation6], 4294965248  ;;  %v45_v0 = vld [vmem:[#allocation5] sm:$0xff]  ;;  %v46_v1 = vld [vmem:[#allocation5 + $0x8] sm:$0xff]  ;;  %s330_s11 = smov [#allocation7]  }
  0x27   :  { %v47_v2 = vld [vmem:[#allocation5 + $0x10] sm:$0xff]  ;;  %v217_v3 = vpack.c.bf16 %v46_v1, %v45_v0  ;;  %v48_v4 = vld [vmem:[#allocation5 + $0x18] sm:$0xff]  ;;  %v49_v7 = vld [vmem:[#allocation5 + $0x20] sm:$0xff]  ;;  %s150_s12 = sshll.u32 %s330_s11, 4  ;;  %s151_s12 = int_to_ptr.vmem [resolvable:$true] %s150_s12 }
  0x28   :  { %v221_v5 = vpack.c.bf16 %v48_v4, %v47_v2  ;;  %v43_v6 = vld [vmem:[#allocation2] sm:$0xff]  ;;  %v50_v8 = vld [vmem:[#allocation5 + $0x28] sm:$0xff]  ;;  %v52_v11 = vld [vmem:[#allocation5 + $0x38] sm:$0xff]  ;;  %s298_s13 = scalar_lea.vmem %s151_s12, 256  ;;  %p303_p3 = scmp.lt.s32.totalorder %s151_s12, %s151_s12 }
  0x29   :  { %218 = vmatprep.subr.bf16.mxu0 %v217_v3  ;;  %214 = vmatprep.mubr.f32.mxu0 %v43_v6  ;;  %v225_v9 = vpack.c.bf16 %v50_v8, %v49_v7  ;;  %v51_v10 = vld [vmem:[#allocation5 + $0x30] sm:$0xff]  ;;  %v53_v13 = vld [vmem:[#allocation5 + $0x40] sm:$0xff]  ;;  %v54_v14 = vld [vmem:[#allocation5 + $0x48] sm:$0xff]  ;;  %p299_p2 = scmp.ne.s32.totalorder %s151_s12, %s298_s13  ;;  %p304_p4 = scmp.lt.s32.totalorder %s298_s13, %s298_s13 }
  0x2a   :  { %220 = vmatpush3.bf16.xpose.msra.mxu0 %v217_v3  ;;  %v229_v12 = vpack.c.bf16 %v52_v11, %v51_v10  ;;  %v233_v15 = vpack.c.bf16 %v54_v14, %v53_v13  ;;  %v55_v16 = vld [vmem:[#allocation5 + $0x50] sm:$0xff]  ;;  %v56_v17 = vld [vmem:[#allocation5 + $0x58] sm:$0xff]  ;;  %v57_v19 = vld [vmem:[#allocation5 + $0x60] sm:$0xff] }
  0x2b   :  { %222 = vmatprep.subr.bf16.mxu0 %v221_v5  ;;  %v237_v18 = vpack.c.bf16 %v56_v17, %v55_v16  ;;  %v58_v20 = vld [vmem:[#allocation5 + $0x68] sm:$0xff]  ;;  %v59_v22 = vld [vmem:[#allocation5 + $0x70] sm:$0xff]  ;;  %v60_v23 = vld [vmem:[#allocation5 + $0x78] sm:$0xff]  ;;  %p305_p5 = por %p304_p4, %p303_p3 }
  0x2c   :  { %v241_v21 = vpack.c.bf16 %v58_v20, %v57_v19  ;;  %v245_v24 = vpack.c.bf16 %v60_v23, %v59_v22  ;;  %v44_v25 = vld [vmem:[#allocation2 + $0x8] sm:$0xff]  ;;  %v163_v26 = vld [vmem:[%s401_s2] ss:$0 sm:$0xff] }
  0x2d   :  { %p306_p6 = pnand %p305_p5, %p299_p2 }
  0x32   :  { %224 = vmatpush3.bf16.xpose.msra.mxu0 %v221_v5 }
  0x33   :  { %226 = vmatprep.subr.bf16.mxu0 %v225_v9 }
  0x3a   :  { %228 = vmatpush3.bf16.xpose.msra.mxu0 %v225_v9 }
  0x3b   :  { %230 = vmatprep.subr.bf16.mxu0 %v229_v12 }
  0x42   :  { %232 = vmatpush3.bf16.xpose.msra.mxu0 %v229_v12 }
  0x43   :  { %234 = vmatprep.subr.bf16.mxu0 %v233_v15 }
  0x4a   :  { %236 = vmatpush3.bf16.xpose.msra.mxu0 %v233_v15 }
  0x4b   :  { %238 = vmatprep.subr.bf16.mxu0 %v237_v18 }
  0x52   :  { %240 = vmatpush3.bf16.xpose.msra.mxu0 %v237_v18 }
  0x53   :  { %242 = vmatprep.subr.bf16.mxu0 %v241_v21 }
  0x5a   :  { %244 = vmatpush3.bf16.xpose.msra.mxu0 %v241_v21 }
  0x5b   :  { %246 = vmatprep.subr.bf16.mxu0 %v245_v24 }
  0x62   :  { %248 = vmatpush3.bf16.xpose.msra.mxu0 %v245_v24 }
  0x69   :  { %215 = vmatmul.mubr.f32.vlgmr.msra.gmra.mrb[0].mxu0 %v44_v25 }
 0x13c   :  { %v216_v27 = vpop.f32.mrb[0].mxu0 }
 0x13d   :  { %v140_v28 = vadd.f32 %v216_v27, %v163_v26  ;;  %v134_v29 = vpop.f32.mrb[1].mxu0 }
 0x13e   :  { %v135_v30 = vadd.f32 %v163_v26, %v134_v29 }
 0x13f   :  { %144 = vst [vmem:[#allocation7 + $0x8] sm:$0xff] %v140_v28 }
 0x140   :  { %143 = vst [vmem:[#allocation7] sm:$0xff] %v135_v30 }
 0x141   :  { %309 = shalt.err (!%p306_p6)
}
 0x142   :  { %s310_s2 = scalar_lea.hbm %s402_s3, 256 }
 0x143   :  { %p311_p7 = scmp.ne.s32.totalorder %s402_s3, %s310_s2  ;;  %p314_p8 = scmp.lt.u32.totalorder %s310_s2, %s402_s3 }
 0x145   :  { %p316_p9 = pnand %p314_p8, %p311_p7 }
 0x147   :  { %319 = shalt.err (!%p316_p9)
}
 0x148   :  { %156 = dma.vmem_to_hbm [thread:$0]  %s151_s12, 256, %s402_s3, [#allocation4], %s327_s22, %s327_s22, %s328_s23  }
 0x149   :  { %324 = dma.done.wait [#allocation4], 256  }
 0x14a   :  { %325 = vsyncadd [#allocation4], 4294967040 }
 0x14b   :  { %160 = vsyncpa [#allocation3], 1 }
 0x14c   :  { %161 = vsyncpa [#allocation6], 1 }
 0x14d   :  { %162 = vsyncpa [#allocation4], 1 }

</bundles_post_ra>
